<compile_context>
chip_gen: v7x
topology: tpu7x:2x2x1
jax: 0.10.0
libtpu: 0.0.40
codegen_flags: <defaults>
</compile_context>

<pallas_src>
import functools
import math

import jax
import jax.numpy as jnp
from jax.experimental import pallas as pl
from jax.experimental.pallas import tpu as pltpu

# Spherical-harmonics constants (identical to the PyTorch module).
C0 = 0.28209479177387814
C1 = 0.4886025119029199
C2 = [1.0925484305920792, -1.0925484305920792, 0.31539156525252005,
      -1.0925484305920792, 0.5462742152960396]
C3 = [-0.5900435899266435, 2.890611442640554, -0.4570457994644658,
      0.3731763325901154, -0.4570457994644658, 1.445305721320277,
      -0.5900435899266435]
C4 = [2.5033429417967046, -1.7701307697799304, 0.9461746957575601,
      -0.6690465435572892, 0.10578554691520431, -0.6690465435572892,
      0.47308734787878004, -1.7701307697799304, 0.6258357354491761]

# Rough per-point multiply/add counts (advisory only; kernel is HBM-bound).
_FLOPS_PER_POINT = {1: 1, 2: 4, 3: 20, 4: 45, 5: 80}


def _sh_kernel(xyz_ref, out_ref, *, degree):
    """xyz_ref: (3, TM, 128) VMEM tile; out_ref: (degree**2, TM, 128) tile."""
    odt = out_ref.dtype
    # Compute in f32 (v5e has no bf16 VALU; harmless elsewhere).
    x = xyz_ref[0].astype(jnp.float32)   # (TM, 128)
    y = xyz_ref[1].astype(jnp.float32)
    z = xyz_ref[2].astype(jnp.float32)

    # Store each SH row as soon as it is produced (bounds live ranges, feeds
    # the store slot incrementally).  The kernel is HBM-write-bound, so the
    # handful of VMEM temporaries at large TM are hidden under the output DMA.
    out_ref[0] = jnp.full(x.shape, C0, dtype=odt)
    if degree > 1:
        out_ref[1] = (-C1 * y).astype(odt)
        out_ref[2] = (C1 * z).astype(odt)
        out_ref[3] = (-C1 * x).astype(odt)
        if degree > 2:
            xx, yy, zz = x * x, y * y, z * z
            xy, yz, xz = x * y, y * z, x * z
            xx_m_yy = xx - yy
            out_ref[4] = (C2[0] * xy).astype(odt)
            out_ref[5] = (C2[1] * yz).astype(odt)
            out_ref[6] = (C2[2] * (2.0 * zz - xx - yy)).astype(odt)
            out_ref[7] = (C2[3] * xz).astype(odt)
            out_ref[8] = (C2[4] * xx_m_yy).astype(odt)
            if degree > 3:
                three_xx_m_yy = 3.0 * xx - yy
                xx_m_3yy = xx - 3.0 * yy
                four_zz_m_xx_yy = 4.0 * zz - xx - yy
                out_ref[9] = (C3[0] * y * three_xx_m_yy).astype(odt)
                out_ref[10] = (C3[1] * xy * z).astype(odt)
                out_ref[11] = (C3[2] * y * four_zz_m_xx_yy).astype(odt)
                out_ref[12] = (C3[3] * z *
                               (2.0 * zz - 3.0 * xx - 3.0 * yy)).astype(odt)
                out_ref[13] = (C3[4] * x * four_zz_m_xx_yy).astype(odt)
                out_ref[14] = (C3[5] * z * xx_m_yy).astype(odt)
                out_ref[15] = (C3[6] * x * xx_m_3yy).astype(odt)
                if degree > 4:
                    seven_zz_m_1 = 7.0 * zz - 1.0
                    seven_zz_m_3 = 7.0 * zz - 3.0
                    out_ref[16] = (C4[0] * xy * xx_m_yy).astype(odt)
                    out_ref[17] = (C4[1] * yz * three_xx_m_yy).astype(odt)
                    out_ref[18] = (C4[2] * xy * seven_zz_m_1).astype(odt)
                    out_ref[19] = (C4[3] * yz * seven_zz_m_3).astype(odt)
                    out_ref[20] = (C4[4] *
                                   (zz * (35.0 * zz - 30.0) + 3.0)).astype(odt)
                    out_ref[21] = (C4[5] * xz * seven_zz_m_3).astype(odt)
                    out_ref[22] = (C4[6] * xx_m_yy * seven_zz_m_1).astype(odt)
                    out_ref[23] = (C4[7] * xz * xx_m_3yy).astype(odt)
                    out_ref[24] = (C4[8] * (xx * xx_m_3yy -
                                            yy * three_xx_m_yy)).astype(odt)


def _num_tensorcores():
    """Heuristic TensorCore count per device (only affects tiling, never
    correctness)."""
    try:
        kind = jax.devices()[0].device_kind.lower()
    except Exception:  # pragma: no cover - defensive
        return 1
    if ("v7" in kind) or ("v4" in kind) or ("v5p" in kind):
        return 2
    return 1


def _choose_tm(m, out_dim, itemsize, num_cores, max_tile_m=None):
    """Pick the sublane tile (rows of 128 points) for the point axis."""
    # Sublane packing multiple for the I/O dtype: 8 (f32) / 16 (bf16) / 32 (8b).
    sub = max(8, 32 // max(int(itemsize), 1))
    if max_tile_m is None:
        # Degree-dependent cap keeps double-buffered blocks + f32 temps well
        # inside every generation's scoped-VMEM budget (with vmem_limit_bytes
        # raised below) while moving multiple MiB per grid step.
        max_tile_m = 256 if out_dim > 16 else 512
    if m <= sub:
        return m                      # one tile; block equals full padded dim
    tm = min(m, max_tile_m)
    if num_cores > 1:
        # Multi-TensorCore parts only: make sure the parallel grid axis has
        # enough steps (>= 2 per core) to feed both TCs with pipelined work.
        tm = min(tm, pl.cdiv(m, 2 * num_cores))
    tm = ((tm + sub - 1) // sub) * sub
    return max(sub, tm)


def sh_encode_slab(xyz_cf, degree=4, max_tile_m=None):
    """Primary, transpose-free entry point.

    xyz_cf: channels-first (3, N) array of 3-D points.
    Returns the channels-first SH feature slab (degree**2, N) — already the
    ideal K-major layout for a following `W @ slab` matmul.
    """
    assert xyz_cf.ndim == 2 and xyz_cf.shape[0] == 3
    assert 1 <= degree <= 5
    out_dim = degree ** 2
    n = xyz_cf.shape[1]
    dtype = xyz_cf.dtype
    if n == 0:
        return jnp.zeros((out_dim, 0), dtype=dtype)

    itemsize = jnp.dtype(dtype).itemsize
    m = pl.cdiv(n, 128)
    tm = _choose_tm(m, out_dim, itemsize, _num_tensorcores(), max_tile_m)
    m_pad = pl.cdiv(m, tm) * tm
    n_pad = m_pad * 128

    # Single pad pass on the already channels-first layout (XLA fuses the pad
    # with the reshape); no separate transpose over the input.
    if n_pad != n:
        xyz_cf = jnp.pad(xyz_cf, ((0, 0), (0, n_pad - n)))
    xyz = xyz_cf.reshape(3, m_pad, 128)

    # Advisory cost model: memory-bound custom call.
    cost = pl.CostEstimate(
        flops=_FLOPS_PER_POINT[degree] * n_pad,
        transcendentals=0,
        bytes_accessed=(3 + out_dim) * n_pad * itemsize)

    # VMEM budget: double-buffered in/out blocks + f32 intermediates, with
    # 2x margin; capped at 48 MiB (safe under v7x's 64 MiB physical VMEM,
    # above v5e's 16 MiB default scoped limit when large tiles need it).
    block_bytes = 2 * (3 + out_dim) * tm * 128 * itemsize
    temp_bytes = 16 * tm * 128 * 4
    vmem_limit = int(min(48 << 20, max(2 * (block_bytes + temp_bytes),
                                       16 << 20)))

    kernel = functools.partial(_sh_kernel, degree=degree)
    out_slab = pl.pallas_call(
        kernel,
        out_shape=jax.ShapeDtypeStruct((out_dim, m_pad, 128), dtype),
        grid_spec=pltpu.PrefetchScalarGridSpec(
            num_scalar_prefetch=0,
            grid=(m_pad // tm,),
            in_specs=[pl.BlockSpec((3, tm, 128), lambda i: (0, i, 0))],
            out_specs=pl.BlockSpec((out_dim, tm, 128), lambda i: (0, i, 0)),
        ),
        compiler_params=pltpu.CompilerParams(
            dimension_semantics=("parallel",),
            vmem_limit_bytes=vmem_limit),
        cost_estimate=cost,
    )(xyz)

    out = out_slab.reshape(out_dim, n_pad)
    if n_pad != n:
        out = out[:, :n]
    return out


def sh_encode(inp, degree=4, max_tile_m=None):
    """Drop-in PyTorch-layout wrapper. inp: (..., 3) -> (..., degree**2)."""
    assert inp.shape[-1] == 3
    assert 1 <= degree <= 5
    out_dim = degree ** 2
    batch_shape = inp.shape[:-1]
    n = math.prod(batch_shape) if batch_shape else 1
    if n == 0:
        return jnp.zeros((*batch_shape, out_dim), dtype=inp.dtype)

    xyz_cf = inp.reshape(n, 3).T                        # (3, N) channels-first
    slab = sh_encode_slab(xyz_cf, degree=degree, max_tile_m=max_tile_m)
    # TODO(synk): consumers that accept the channels-first (out_dim, N) slab
    # should call sh_encode_slab directly and skip this whole-output transpose
    # (it roughly 2.5x's end-to-end HBM traffic vs. the kernel alone).
    return slab.T.reshape(*batch_shape, out_dim)


def _sh_reference(inp, degree=4):
    """Pure-JAX reference mirroring the PyTorch forward (degrees 1..5)."""
    x, y, z = inp[..., 0], inp[..., 1], inp[..., 2]
    cols = [jnp.full_like(x, C0)]
    if degree > 1:
        cols += [-C1 * y, C1 * z, -C1 * x]
        if degree > 2:
            xx, yy, zz = x * x, y * y, z * z
            xy, yz, xz = x * y, y * z, x * z
            cols += [C2[0] * xy, C2[1] * yz, C2[2] * (2.0 * zz - xx - yy),
                     C2[3] * xz, C2[4] * (xx - yy)]
            if degree > 3:
                cols += [C3[0] * y * (3 * xx - yy), C3[1] * xy * z,
                         C3[2] * y * (4 * zz - xx - yy),
                         C3[3] * z * (2 * zz - 3 * xx - 3 * yy),
                         C3[4] * x * (4 * zz - xx - yy),
                         C3[5] * z * (xx - yy), C3[6] * x * (xx - 3 * yy)]
                if degree > 4:
                    cols += [C4[0] * xy * (xx - yy),
                             C4[1] * yz * (3 * xx - yy),
                             C4[2] * xy * (7 * zz - 1),
                             C4[3] * yz * (7 * zz - 3),
                             C4[4] * (zz * (35 * zz - 30) + 3),
                             C4[5] * xz * (7 * zz - 3),
                             C4[6] * (xx - yy) * (7 * zz - 1),
                             C4[7] * xz * (xx - 3 * yy),
                             C4[8] * (xx * (xx - 3 * yy) - yy * (3 * xx - yy))]
    return jnp.stack(cols, axis=-1).astype(inp.dtype)


if __name__ == "__main__":
    key = jax.random.PRNGKey(0)
    k1, k2 = jax.random.split(key)

    # Small example consistent with the module: batch of unit 3D directions.
    x_small = jax.random.normal(k1, (2, 4, 16, 3), dtype=jnp.float32)
    x_small = x_small / jnp.linalg.norm(x_small, axis=-1, keepdims=True)

    out_small = jax.block_until_ready(sh_encode(x_small, degree=4))
    assert out_small.shape == (2, 4, 16, 16), out_small.shape
    ref_small = _sh_reference(x_small, degree=4)
    assert jnp.allclose(out_small, ref_small, atol=1e-5, rtol=1e-5), \
        "mismatch vs reference (small)"

    # Non-multiple-of-128 point count: exercises padding and multi-row tiles.
    x_big = jax.random.normal(k2, (2, 3, 257, 3), dtype=jnp.float32)
    x_big = x_big / jnp.linalg.norm(x_big, axis=-1, keepdims=True)

    out_big = jax.block_until_ready(sh_encode(x_big, degree=4))
    assert out_big.shape == (2, 3, 257, 16), out_big.shape
    ref_big = _sh_reference(x_big, degree=4)
    assert jnp.allclose(out_big, ref_big, atol=1e-5, rtol=1e-5), \
        "mismatch vs reference (big)"

    print("KERNEL_OK")
</pallas_src>

<mosaic_0001>
module attributes {stable_mosaic.version = 11 : i64} {
  func.func @_sh_kernel(%arg0: i32, %arg1: memref<3x1x128xf32, #tpu.memory_space<vmem>>, %arg2: memref<16x1x128xf32, #tpu.memory_space<vmem>>) attributes {dimension_semantics = [#tpu.dimension_semantics<parallel>], iteration_bounds = array<i64: 1>, scalar_prefetch = 0 : i64, scratch_operands = 0 : i64, tpu.core_type = #tpu.core_type<tc>, window_params = [{transform_indices = @transform_0, window_bounds = array<i64: 3, 1, 128>}, {transform_indices = @transform_1, window_bounds = array<i64: 16, 1, 128>}]} {
    %c0 = arith.constant 0 : index
    %c0_0 = arith.constant 0 : index
    %c0_1 = arith.constant 0 : index
    %0 = vector.load %arg1[%c0, %c0_0, %c0_1] : memref<3x1x128xf32, #tpu.memory_space<vmem>>, vector<1x1x128xf32>
    %1 = vector.shape_cast %0 : vector<1x1x128xf32> to vector<1x128xf32>
    %c1 = arith.constant 1 : index
    %c0_2 = arith.constant 0 : index
    %c0_3 = arith.constant 0 : index
    %2 = vector.load %arg1[%c1, %c0_2, %c0_3] : memref<3x1x128xf32, #tpu.memory_space<vmem>>, vector<1x1x128xf32>
    %3 = vector.shape_cast %2 : vector<1x1x128xf32> to vector<1x128xf32>
    %c2 = arith.constant 2 : index
    %c0_4 = arith.constant 0 : index
    %c0_5 = arith.constant 0 : index
    %4 = vector.load %arg1[%c2, %c0_4, %c0_5] : memref<3x1x128xf32, #tpu.memory_space<vmem>>, vector<1x1x128xf32>
    %5 = vector.shape_cast %4 : vector<1x1x128xf32> to vector<1x128xf32>
    %cst = arith.constant 0.282094806 : f32
    %6 = vector.broadcast %cst : f32 to vector<1x128xf32>
    %c0_6 = arith.constant 0 : index
    %c0_7 = arith.constant 0 : index
    %c0_8 = arith.constant 0 : index
    %7 = vector.load %arg2[%c0_6, %c0_7, %c0_8] : memref<16x1x128xf32, #tpu.memory_space<vmem>>, vector<1x1x128xf32>
    %8 = vector.shape_cast %7 : vector<1x1x128xf32> to vector<1x128xf32>
    %9 = vector.shape_cast %6 : vector<1x128xf32> to vector<1x1x128xf32>
    tpu.vector_store %arg2[%c0_6, %c0_7, %c0_8], %9 {strides = array<i32>} : memref<16x1x128xf32, #tpu.memory_space<vmem>>, vector<1x1x128xf32>,
    %cst_9 = arith.constant -0.488602519 : f32
    %10 = vector.broadcast %cst_9 : f32 to vector<1x128xf32>
    %11 = arith.mulf %10, %3 : vector<1x128xf32>
    %c1_10 = arith.constant 1 : index
    %c0_11 = arith.constant 0 : index
    %c0_12 = arith.constant 0 : index
    %12 = vector.load %arg2[%c1_10, %c0_11, %c0_12] : memref<16x1x128xf32, #tpu.memory_space<vmem>>, vector<1x1x128xf32>
    %13 = vector.shape_cast %12 : vector<1x1x128xf32> to vector<1x128xf32>
    %14 = vector.shape_cast %11 : vector<1x128xf32> to vector<1x1x128xf32>
    tpu.vector_store %arg2[%c1_10, %c0_11, %c0_12], %14 {strides = array<i32>} : memref<16x1x128xf32, #tpu.memory_space<vmem>>, vector<1x1x128xf32>,
    %cst_13 = arith.constant 0.488602519 : f32
    %15 = vector.broadcast %cst_13 : f32 to vector<1x128xf32>
    %16 = arith.mulf %15, %5 : vector<1x128xf32>
    %c2_14 = arith.constant 2 : index
    %c0_15 = arith.constant 0 : index
    %c0_16 = arith.constant 0 : index
    %17 = vector.load %arg2[%c2_14, %c0_15, %c0_16] : memref<16x1x128xf32, #tpu.memory_space<vmem>>, vector<1x1x128xf32>
    %18 = vector.shape_cast %17 : vector<1x1x128xf32> to vector<1x128xf32>
    %19 = vector.shape_cast %16 : vector<1x128xf32> to vector<1x1x128xf32>
    tpu.vector_store %arg2[%c2_14, %c0_15, %c0_16], %19 {strides = array<i32>} : memref<16x1x128xf32, #tpu.memory_space<vmem>>, vector<1x1x128xf32>,
    %cst_17 = arith.constant -0.488602519 : f32
    %20 = vector.broadcast %cst_17 : f32 to vector<1x128xf32>
    %21 = arith.mulf %20, %1 : vector<1x128xf32>
    %c3 = arith.constant 3 : index
    %c0_18 = arith.constant 0 : index
    %c0_19 = arith.constant 0 : index
    %22 = vector.load %arg2[%c3, %c0_18, %c0_19] : memref<16x1x128xf32, #tpu.memory_space<vmem>>, vector<1x1x128xf32>
    %23 = vector.shape_cast %22 : vector<1x1x128xf32> to vector<1x128xf32>
    %24 = vector.shape_cast %21 : vector<1x128xf32> to vector<1x1x128xf32>
    tpu.vector_store %arg2[%c3, %c0_18, %c0_19], %24 {strides = array<i32>} : memref<16x1x128xf32, #tpu.memory_space<vmem>>, vector<1x1x128xf32>,
    %25 = arith.mulf %1, %1 : vector<1x128xf32>
    %26 = arith.mulf %3, %3 : vector<1x128xf32>
    %27 = arith.mulf %5, %5 : vector<1x128xf32>
    %28 = arith.mulf %1, %3 : vector<1x128xf32>
    %29 = arith.mulf %3, %5 : vector<1x128xf32>
    %30 = arith.mulf %1, %5 : vector<1x128xf32>
    %31 = arith.subf %25, %26 : vector<1x128xf32>
    %cst_20 = arith.constant 1.09254849 : f32
    %32 = vector.broadcast %cst_20 : f32 to vector<1x128xf32>
    %33 = arith.mulf %32, %28 : vector<1x128xf32>
    %c4 = arith.constant 4 : index
    %c0_21 = arith.constant 0 : index
    %c0_22 = arith.constant 0 : index
    %34 = vector.load %arg2[%c4, %c0_21, %c0_22] : memref<16x1x128xf32, #tpu.memory_space<vmem>>, vector<1x1x128xf32>
    %35 = vector.shape_cast %34 : vector<1x1x128xf32> to vector<1x128xf32>
    %36 = vector.shape_cast %33 : vector<1x128xf32> to vector<1x1x128xf32>
    tpu.vector_store %arg2[%c4, %c0_21, %c0_22], %36 {strides = array<i32>} : memref<16x1x128xf32, #tpu.memory_space<vmem>>, vector<1x1x128xf32>,
    %cst_23 = arith.constant -1.09254849 : f32
    %37 = vector.broadcast %cst_23 : f32 to vector<1x128xf32>
    %38 = arith.mulf %37, %29 : vector<1x128xf32>
    %c5 = arith.constant 5 : index
    %c0_24 = arith.constant 0 : index
    %c0_25 = arith.constant 0 : index
    %39 = vector.load %arg2[%c5, %c0_24, %c0_25] : memref<16x1x128xf32, #tpu.memory_space<vmem>>, vector<1x1x128xf32>
    %40 = vector.shape_cast %39 : vector<1x1x128xf32> to vector<1x128xf32>
    %41 = vector.shape_cast %38 : vector<1x128xf32> to vector<1x1x128xf32>
    tpu.vector_store %arg2[%c5, %c0_24, %c0_25], %41 {strides = array<i32>} : memref<16x1x128xf32, #tpu.memory_space<vmem>>, vector<1x1x128xf32>,
    %cst_26 = arith.constant 2.000000e+00 : f32
    %42 = vector.broadcast %cst_26 : f32 to vector<1x128xf32>
    %43 = arith.mulf %42, %27 : vector<1x128xf32>
    %44 = arith.subf %43, %25 : vector<1x128xf32>
    %45 = arith.subf %44, %26 : vector<1x128xf32>
    %cst_27 = arith.constant 0.31539157 : f32
    %46 = vector.broadcast %cst_27 : f32 to vector<1x128xf32>
    %47 = arith.mulf %46, %45 : vector<1x128xf32>
    %c6 = arith.constant 6 : index
    %c0_28 = arith.constant 0 : index
    %c0_29 = arith.constant 0 : index
    %48 = vector.load %arg2[%c6, %c0_28, %c0_29] : memref<16x1x128xf32, #tpu.memory_space<vmem>>, vector<1x1x128xf32>
    %49 = vector.shape_cast %48 : vector<1x1x128xf32> to vector<1x128xf32>
    %50 = vector.shape_cast %47 : vector<1x128xf32> to vector<1x1x128xf32>
    tpu.vector_store %arg2[%c6, %c0_28, %c0_29], %50 {strides = array<i32>} : memref<16x1x128xf32, #tpu.memory_space<vmem>>, vector<1x1x128xf32>,
    %cst_30 = arith.constant -1.09254849 : f32
    %51 = vector.broadcast %cst_30 : f32 to vector<1x128xf32>
    %52 = arith.mulf %51, %30 : vector<1x128xf32>
    %c7 = arith.constant 7 : index
    %c0_31 = arith.constant 0 : index
    %c0_32 = arith.constant 0 : index
    %53 = vector.load %arg2[%c7, %c0_31, %c0_32] : memref<16x1x128xf32, #tpu.memory_space<vmem>>, vector<1x1x128xf32>
    %54 = vector.shape_cast %53 : vector<1x1x128xf32> to vector<1x128xf32>
    %55 = vector.shape_cast %52 : vector<1x128xf32> to vector<1x1x128xf32>
    tpu.vector_store %arg2[%c7, %c0_31, %c0_32], %55 {strides = array<i32>} : memref<16x1x128xf32, #tpu.memory_space<vmem>>, vector<1x1x128xf32>,
    %cst_33 = arith.constant 0.546274245 : f32
    %56 = vector.broadcast %cst_33 : f32 to vector<1x128xf32>
    %57 = arith.mulf %56, %31 : vector<1x128xf32>
    %c8 = arith.constant 8 : index
    %c0_34 = arith.constant 0 : index
    %c0_35 = arith.constant 0 : index
    %58 = vector.load %arg2[%c8, %c0_34, %c0_35] : memref<16x1x128xf32, #tpu.memory_space<vmem>>, vector<1x1x128xf32>
    %59 = vector.shape_cast %58 : vector<1x1x128xf32> to vector<1x128xf32>
    %60 = vector.shape_cast %57 : vector<1x128xf32> to vector<1x1x128xf32>
    tpu.vector_store %arg2[%c8, %c0_34, %c0_35], %60 {strides = array<i32>} : memref<16x1x128xf32, #tpu.memory_space<vmem>>, vector<1x1x128xf32>,
    %cst_36 = arith.constant 3.000000e+00 : f32
    %61 = vector.broadcast %cst_36 : f32 to vector<1x128xf32>
    %62 = arith.mulf %61, %25 : vector<1x128xf32>
    %63 = arith.subf %62, %26 : vector<1x128xf32>
    %cst_37 = arith.constant 3.000000e+00 : f32
    %64 = vector.broadcast %cst_37 : f32 to vector<1x128xf32>
    %65 = arith.mulf %64, %26 : vector<1x128xf32>
    %66 = arith.subf %25, %65 : vector<1x128xf32>
    %cst_38 = arith.constant 4.000000e+00 : f32
    %67 = vector.broadcast %cst_38 : f32 to vector<1x128xf32>
    %68 = arith.mulf %67, %27 : vector<1x128xf32>
    %69 = arith.subf %68, %25 : vector<1x128xf32>
    %70 = arith.subf %69, %26 : vector<1x128xf32>
    %cst_39 = arith.constant -0.590043604 : f32
    %71 = vector.broadcast %cst_39 : f32 to vector<1x128xf32>
    %72 = arith.mulf %71, %3 : vector<1x128xf32>
    %73 = arith.mulf %72, %63 : vector<1x128xf32>
    %c9 = arith.constant 9 : index
    %c0_40 = arith.constant 0 : index
    %c0_41 = arith.constant 0 : index
    %74 = vector.load %arg2[%c9, %c0_40, %c0_41] : memref<16x1x128xf32, #tpu.memory_space<vmem>>, vector<1x1x128xf32>
    %75 = vector.shape_cast %74 : vector<1x1x128xf32> to vector<1x128xf32>
    %76 = vector.shape_cast %73 : vector<1x128xf32> to vector<1x1x128xf32>
    tpu.vector_store %arg2[%c9, %c0_40, %c0_41], %76 {strides = array<i32>} : memref<16x1x128xf32, #tpu.memory_space<vmem>>, vector<1x1x128xf32>,
    %cst_42 = arith.constant 2.89061141 : f32
    %77 = vector.broadcast %cst_42 : f32 to vector<1x128xf32>
    %78 = arith.mulf %77, %28 : vector<1x128xf32>
    %79 = arith.mulf %78, %5 : vector<1x128xf32>
    %c10 = arith.constant 10 : index
    %c0_43 = arith.constant 0 : index
    %c0_44 = arith.constant 0 : index
    %80 = vector.load %arg2[%c10, %c0_43, %c0_44] : memref<16x1x128xf32, #tpu.memory_space<vmem>>, vector<1x1x128xf32>
    %81 = vector.shape_cast %80 : vector<1x1x128xf32> to vector<1x128xf32>
    %82 = vector.shape_cast %79 : vector<1x128xf32> to vector<1x1x128xf32>
    tpu.vector_store %arg2[%c10, %c0_43, %c0_44], %82 {strides = array<i32>} : memref<16x1x128xf32, #tpu.memory_space<vmem>>, vector<1x1x128xf32>,
    %cst_45 = arith.constant -0.457045794 : f32
    %83 = vector.broadcast %cst_45 : f32 to vector<1x128xf32>
    %84 = arith.mulf %83, %3 : vector<1x128xf32>
    %85 = arith.mulf %84, %70 : vector<1x128xf32>
    %c11 = arith.constant 11 : index
    %c0_46 = arith.constant 0 : index
    %c0_47 = arith.constant 0 : index
    %86 = vector.load %arg2[%c11, %c0_46, %c0_47] : memref<16x1x128xf32, #tpu.memory_space<vmem>>, vector<1x1x128xf32>
    %87 = vector.shape_cast %86 : vector<1x1x128xf32> to vector<1x128xf32>
    %88 = vector.shape_cast %85 : vector<1x128xf32> to vector<1x1x128xf32>
    tpu.vector_store %arg2[%c11, %c0_46, %c0_47], %88 {strides = array<i32>} : memref<16x1x128xf32, #tpu.memory_space<vmem>>, vector<1x1x128xf32>,
    %cst_48 = arith.constant 0.373176336 : f32
    %89 = vector.broadcast %cst_48 : f32 to vector<1x128xf32>
    %90 = arith.mulf %89, %5 : vector<1x128xf32>
    %cst_49 = arith.constant 2.000000e+00 : f32
    %91 = vector.broadcast %cst_49 : f32 to vector<1x128xf32>
    %92 = arith.mulf %91, %27 : vector<1x128xf32>
    %cst_50 = arith.constant 3.000000e+00 : f32
    %93 = vector.broadcast %cst_50 : f32 to vector<1x128xf32>
    %94 = arith.mulf %93, %25 : vector<1x128xf32>
    %95 = arith.subf %92, %94 : vector<1x128xf32>
    %cst_51 = arith.constant 3.000000e+00 : f32
    %96 = vector.broadcast %cst_51 : f32 to vector<1x128xf32>
    %97 = arith.mulf %96, %26 : vector<1x128xf32>
    %98 = arith.subf %95, %97 : vector<1x128xf32>
    %99 = arith.mulf %90, %98 : vector<1x128xf32>
    %c12 = arith.constant 12 : index
    %c0_52 = arith.constant 0 : index
    %c0_53 = arith.constant 0 : index
    %100 = vector.load %arg2[%c12, %c0_52, %c0_53] : memref<16x1x128xf32, #tpu.memory_space<vmem>>, vector<1x1x128xf32>
    %101 = vector.shape_cast %100 : vector<1x1x128xf32> to vector<1x128xf32>
    %102 = vector.shape_cast %99 : vector<1x128xf32> to vector<1x1x128xf32>
    tpu.vector_store %arg2[%c12, %c0_52, %c0_53], %102 {strides = array<i32>} : memref<16x1x128xf32, #tpu.memory_space<vmem>>, vector<1x1x128xf32>,
    %cst_54 = arith.constant -0.457045794 : f32
    %103 = vector.broadcast %cst_54 : f32 to vector<1x128xf32>
    %104 = arith.mulf %103, %1 : vector<1x128xf32>
    %105 = arith.mulf %104, %70 : vector<1x128xf32>
    %c13 = arith.constant 13 : index
    %c0_55 = arith.constant 0 : index
    %c0_56 = arith.constant 0 : index
    %106 = vector.load %arg2[%c13, %c0_55, %c0_56] : memref<16x1x128xf32, #tpu.memory_space<vmem>>, vector<1x1x128xf32>
    %107 = vector.shape_cast %106 : vector<1x1x128xf32> to vector<1x128xf32>
    %108 = vector.shape_cast %105 : vector<1x128xf32> to vector<1x1x128xf32>
    tpu.vector_store %arg2[%c13, %c0_55, %c0_56], %108 {strides = array<i32>} : memref<16x1x128xf32, #tpu.memory_space<vmem>>, vector<1x1x128xf32>,
    %cst_57 = arith.constant 1.44530571 : f32
    %109 = vector.broadcast %cst_57 : f32 to vector<1x128xf32>
    %110 = arith.mulf %109, %5 : vector<1x128xf32>
    %111 = arith.mulf %110, %31 : vector<1x128xf32>
    %c14 = arith.constant 14 : index
    %c0_58 = arith.constant 0 : index
    %c0_59 = arith.constant 0 : index
    %112 = vector.load %arg2[%c14, %c0_58, %c0_59] : memref<16x1x128xf32, #tpu.memory_space<vmem>>, vector<1x1x128xf32>
    %113 = vector.shape_cast %112 : vector<1x1x128xf32> to vector<1x128xf32>
    %114 = vector.shape_cast %111 : vector<1x128xf32> to vector<1x1x128xf32>
    tpu.vector_store %arg2[%c14, %c0_58, %c0_59], %114 {strides = array<i32>} : memref<16x1x128xf32, #tpu.memory_space<vmem>>, vector<1x1x128xf32>,
    %cst_60 = arith.constant -0.590043604 : f32
    %115 = vector.broadcast %cst_60 : f32 to vector<1x128xf32>
    %116 = arith.mulf %115, %1 : vector<1x128xf32>
    %117 = arith.mulf %116, %66 : vector<1x128xf32>
    %c15 = arith.constant 15 : index
    %c0_61 = arith.constant 0 : index
    %c0_62 = arith.constant 0 : index
    %118 = vector.load %arg2[%c15, %c0_61, %c0_62] : memref<16x1x128xf32, #tpu.memory_space<vmem>>, vector<1x1x128xf32>
    %119 = vector.shape_cast %118 : vector<1x1x128xf32> to vector<1x128xf32>
    %120 = vector.shape_cast %117 : vector<1x128xf32> to vector<1x1x128xf32>
    tpu.vector_store %arg2[%c15, %c0_61, %c0_62], %120 {strides = array<i32>} : memref<16x1x128xf32, #tpu.memory_space<vmem>>, vector<1x1x128xf32>,
    return
  }
  func.func @transform_0(%arg0: i32) -> (i32, i32, i32) {
    %c0_i32 = arith.constant 0 : i32
    %c0_i32_0 = arith.constant 0 : i32
    %c0_i32_1 = arith.constant 0 : i32
    return %c0_i32, %arg0, %c0_i32_0 : i32, i32, i32
  }
  func.func @transform_1(%arg0: i32) -> (i32, i32, i32) {
    %c0_i32 = arith.constant 0 : i32
    %c0_i32_0 = arith.constant 0 : i32
    %c0_i32_1 = arith.constant 0 : i32
    return %c0_i32, %arg0, %c0_i32_0 : i32, i32, i32
  }
}

</mosaic_0001>

<bundles_post_ra>
// kernel: tpu_custom_call.1
= control target key start
LH: loop header
LB: loop body
LE: loop exit
PB: predicated region body
PF: predicated region fallthrough
CT: control target
= control target key end

     0   :  { %6 = vsyncpa [#allocation3], 0  ;;  %s215_s0 = inlined_call_operand.hbm [shape: f32[3,1,128], index: 0, kind: input, shape index: {}]   ;;  %s216_s1 = inlined_call_operand.hbm [shape: f32[16,1,128], index: 1, kind: output, shape index: {}]  }
   0x1   :  { %7 = vsyncpa [#allocation4], 0  ;;  %s170_s6 = smov [#allocation2]   ;;  %s122_s10 = scalar_lea.hbm %s215_s0, 48 }
   0x2   :  { %s13_s7 = sshll.u32 %s170_s6, 4  ;;  %p123_p0 = scmp.ne.s32.totalorder %s215_s0, %s122_s10  ;;  %s14_s7 = int_to_ptr.vmem [resolvable:$true] %s13_s7 }
   0x3   :  { %p126_p1 = scmp.lt.u32.totalorder %s122_s10, %s215_s0 }
   0x5   :  { %p128_p2 = pnand %p126_p1, %p123_p0 }
   0x7   :  { %131 = shalt.err (!%p128_p2)
}
   0x8   :  { %s132_s15 = scalar_lea.vmem %s14_s7, 48  ;;  %s136_s16 = scalar_lea.vmem %s14_s7, 64 }
   0x9   :  { %p133_p3 = scmp.ne.s32.totalorder %s14_s7, %s132_s15  ;;  %p137_p4 = scmp.lt.s32.totalorder %s14_s7, %s14_s7 }
   0xa   :  { %p138_p5 = scmp.lt.s32.totalorder %s136_s16, %s132_s15 }
   0xc   :  { %p139_p6 = por %p138_p5, %p137_p4 }
   0xe   :  { %p140_p7 = pnand %p139_p6, %p133_p3 }
  0x10   :  { %143 = shalt.err (!%p140_p7)
}
  0x11   :  { %s171_s17 = smov 16   ;;  %s172_s18 = smov 1  }
  0x12   :  { %19 = dma.hbm_to_vmem [thread:$0]  %s215_s0, 48, %s14_s7, [#allocation3], %s171_s17, %s171_s17, %s172_s18  }
  0x13   :  { %166 = dma.done.wait [#allocation3], 48  }
  0x14   :  { %167 = vsyncadd [#allocation3], 4294967248  ;;  %v173_v0 = vmov 0.2820948   ;;  %v25_v1 = vld [vmem:[#allocation2 + $0x1] sm:$0x1] }
  0x15   :  { %28 = vst [vmem:[#allocation5] sm:$0x1] %v173_v0  ;;  %v27_v2 = vld [vmem:[#allocation2 + $0x2] sm:$0x1]  ;;  %v23_v3 = vld [vmem:[#allocation2] sm:$0x1]  ;;  %v39_v10 = vmul.f32 %v25_v1, %v25_v1 }
  0x16   :  { %v29_v4 = vmul.f32 -0.48860252, %v25_v1  ;;  %v32_v5 = vmul.f32 0.48860252, %v27_v2  ;;  %v35_v6 = vmul.f32 -0.48860252, %v23_v3  ;;  %v41_v7 = vmul.f32 %v25_v1, %v23_v3 }
  0x17   :  { %v42_v8 = vmul.f32 %v27_v2, %v25_v1  ;;  %v38_v9 = vmul.f32 %v23_v3, %v23_v3  ;;  %v40_v11 = vmul.f32 %v27_v2, %v27_v2  ;;  %v43_v13 = vmul.f32 %v27_v2, %v23_v3  ;;  %s174_s0 = smov [#allocation5]  }
  0x18   :  { %31 = vst [vmem:[#allocation5 + $0x1] sm:$0x1] %v29_v4  ;;  %34 = vst [vmem:[#allocation5 + $0x2] sm:$0x1] %v32_v5  ;;  %v45_v12 = vmul.f32 1.0925485, %v41_v7 }
  0x19   :  { %37 = vst [vmem:[#allocation5 + $0x3] sm:$0x1] %v35_v6  ;;  %v70_v14 = vmul.f32 -0.5900436, %v25_v1  ;;  %v74_v15 = vmul.f32 2.8906114, %v41_v7  ;;  %v44_v18 = vsub.f32 %v38_v9, %v39_v10 }
  0x1a   :  { %v48_v16 = vmul.f32 -1.0925485, %v42_v8  ;;  %v51_v17 = vmul.f32 2.0, %v40_v11  ;;  %v63_v19 = vmul.f32 3.0, %v38_v9  ;;  %47 = vst [vmem:[#allocation5 + $0x4] sm:$0x1] %v45_v12 }
  0x1b   :  { %v57_v20 = vmul.f32 -1.0925485, %v43_v13  ;;  %v75_v21 = vmul.f32 %v74_v15, %v27_v2  ;;  %v67_v22 = vmul.f32 4.0, %v40_v11  ;;  %v78_v23 = vmul.f32 -0.4570458, %v25_v1  ;;  %s105_s21 = sshll.u32 %s174_s0, 4  ;;  %s106_s21 = int_to_ptr.vmem [resolvable:$true] %s105_s21 }
  0x1c   :  { %50 = vst [vmem:[#allocation5 + $0x5] sm:$0x1] %v48_v16  ;;  %v52_v24 = vsub.f32 %v51_v17, %v38_v9  ;;  %v60_v25 = vmul.f32 0.54627424, %v44_v18  ;;  %v64_v26 = vsub.f32 %v63_v19, %v39_v10  ;;  %v65_v27 = vmul.f32 3.0, %v39_v10  ;;  %s144_s22 = scalar_lea.vmem %s106_s21, 256  ;;  %p149_p9 = scmp.lt.s32.totalorder %s106_s21, %s106_s21 }
  0x1d   :  { %59 = vst [vmem:[#allocation5 + $0x7] sm:$0x1] %v57_v20  ;;  %77 = vst [vmem:[#allocation5 + $0xa] sm:$0x1] %v75_v21  ;;  %v68_v28 = vsub.f32 %v67_v22, %v38_v9  ;;  %v82_v29 = vmul.f32 0.37317634, %v27_v2  ;;  %v83_v30 = vsub.f32 %v51_v17, %v63_v19  ;;  %p145_p8 = scmp.ne.s32.totalorder %s106_s21, %s144_s22  ;;  %p150_p10 = scmp.lt.s32.totalorder %s144_s22, %s144_s22 }
  0x1e   :  { %v88_v31 = vmul.f32 -0.4570458, %v23_v3  ;;  %v53_v32 = vsub.f32 %v52_v24, %v39_v10  ;;  %62 = vst [vmem:[#allocation5 + $0x8] sm:$0x1] %v60_v25  ;;  %v71_v33 = vmul.f32 %v70_v14, %v64_v26  ;;  %v92_v34 = vmul.f32 1.4453057, %v27_v2 }
  0x1f   :  { %v66_v35 = vsub.f32 %v38_v9, %v65_v27  ;;  %v69_v36 = vsub.f32 %v68_v28, %v39_v10  ;;  %v84_v37 = vsub.f32 %v83_v30, %v65_v27  ;;  %v96_v38 = vmul.f32 -0.5900436, %v23_v3  ;;  %p151_p11 = por %p150_p10, %p149_p9 }
  0x20   :  { %v54_v39 = vmul.f32 0.31539157, %v53_v32  ;;  %73 = vst [vmem:[#allocation5 + $0x9] sm:$0x1] %v71_v33  ;;  %v93_v40 = vmul.f32 %v92_v34, %v44_v18 }
  0x21   :  { %v79_v41 = vmul.f32 %v78_v23, %v69_v36  ;;  %v85_v42 = vmul.f32 %v84_v37, %v82_v29  ;;  %v89_v43 = vmul.f32 %v88_v31, %v69_v36  ;;  %v97_v44 = vmul.f32 %v96_v38, %v66_v35  ;;  %p152_p12 = pnand %p151_p11, %p145_p8 }
  0x22   :  { %56 = vst [vmem:[#allocation5 + $0x6] sm:$0x1] %v54_v39  ;;  %95 = vst [vmem:[#allocation5 + $0xe] sm:$0x1] %v93_v40 }
  0x23   :  { %81 = vst [vmem:[#allocation5 + $0xb] sm:$0x1] %v79_v41  ;;  %87 = vst [vmem:[#allocation5 + $0xc] sm:$0x1] %v85_v42 }
  0x24   :  { %91 = vst [vmem:[#allocation5 + $0xd] sm:$0x1] %v89_v43  ;;  %99 = vst [vmem:[#allocation5 + $0xf] sm:$0x1] %v97_v44 }
  0x25   :  { %155 = shalt.err (!%p152_p12)
}
  0x26   :  { %s156_s25 = scalar_lea.hbm %s216_s1, 256 }
  0x27   :  { %p157_p13 = scmp.ne.s32.totalorder %s216_s1, %s156_s25  ;;  %p160_p0 = scmp.lt.u32.totalorder %s156_s25, %s216_s1 }
  0x29   :  { %p162_p1 = pnand %p160_p0, %p157_p13 }
  0x2b   :  { %165 = shalt.err (!%p162_p1)
}
  0x2c   :  { %111 = dma.vmem_to_hbm [thread:$0]  %s106_s21, 256, %s216_s1, [#allocation4], %s171_s17, %s171_s17, %s172_s18  }
  0x2d   :  { %168 = dma.done.wait [#allocation4], 256  }
  0x2e   :  { %169 = vsyncadd [#allocation4], 4294967040 }
  0x2f   :  { %115 = vsyncpa [#allocation3], 1 }
  0x30   :  { %116 = vsyncpa [#allocation4], 1 }

</bundles_post_ra>
